<compile_context>
chip_gen: v6e
topology: v6e:2x2x1
jax: 0.10.0
libtpu: 0.0.40
codegen_flags: <defaults>
</compile_context>

<pallas_src>
import jax
import jax.numpy as jnp
from jax.experimental import pallas as pl
from jax.experimental.pallas import tpu as pltpu

D_IN, D_H, D_OUT = 9, 64, 2
D_OUT_PAD = 128  # lane-dense output width (padded, sliced back in wrapper)


def mlp_kernel(x_ref, w1_ref, b1_ref, w2_ref, b2_ref, w3_ref, b3_ref, o_ref):
    # Linear(9, 64) + ReLU
    h1 = jnp.dot(x_ref[...], w1_ref[...], preferred_element_type=jnp.float32)
    h1 = jnp.maximum(h1 + b1_ref[...], 0.0)
    # Linear(64, 64) + ReLU
    h2 = jnp.dot(h1, w2_ref[...], preferred_element_type=jnp.float32)
    h2 = jnp.maximum(h2 + b2_ref[...], 0.0)
    # Linear(64, 128-padded-2): lane-dense store (full 128-wide last dim)
    o = jnp.dot(h2, w3_ref[...], preferred_element_type=jnp.float32)
    o_ref[...] = (o + b3_ref[...]).astype(o_ref.dtype)


def _round_up(a, m):
    return (a + m - 1) // m * m


def mlp_forward(x, params, *, tile_b=1024):
    """x: (B, 9) float32. params: dict of weights/biases. Returns (B, 2)."""
    w1, b1, w2, b2, w3, b3 = (
        params["w1"], params["b1"], params["w2"],
        params["b2"], params["w3"], params["b3"],
    )
    B = x.shape[0]

    # Zero-pad the last layer to a lane-dense (multiple-of-128) output width.
    w3p = jnp.zeros((D_H, D_OUT_PAD), w3.dtype).at[:, :D_OUT].set(w3)
    b3p = jnp.zeros((1, D_OUT_PAD), b3.dtype).at[:, :D_OUT].set(b3)

    # Effective tile: sublane-aligned, capped so the grid keeps >= 2 steps
    # when B is large enough (both TensorCores used on v7x).
    tile_b_eff = max(8, min(_round_up(tile_b, 8), _round_up(pl.cdiv(B, 2), 8)))

    # Pad batch to a tile multiple (masked tail handled by zero-padding rows).
    B_pad = _round_up(B, tile_b_eff)
    if B_pad != B:
        x = jnp.concatenate(
            [x, jnp.zeros((B_pad - B, D_IN), x.dtype)], axis=0)
    grid = (B_pad // tile_b_eff,)

    full = lambda shape: pl.BlockSpec(shape, lambda i: (0, 0))  # grid-invariant

    flops = 2 * B_pad * (D_IN * D_H + D_H * D_H + D_H * D_OUT_PAD)
    bytes_accessed = 4 * (
        B_pad * D_IN + B_pad * D_OUT_PAD
        + D_IN * D_H + D_H + D_H * D_H + D_H + D_H * D_OUT_PAD + D_OUT_PAD
    )

    out_padded = pl.pallas_call(
        mlp_kernel,
        out_shape=jax.ShapeDtypeStruct((B_pad, D_OUT_PAD), jnp.float32),
        grid_spec=pltpu.PrefetchScalarGridSpec(
            num_scalar_prefetch=0,
            grid=grid,
            in_specs=[
                pl.BlockSpec((tile_b_eff, D_IN), lambda i: (i, 0)),  # x tile
                full((D_IN, D_H)),       # w1
                full((1, D_H)),          # b1
                full((D_H, D_H)),        # w2
                full((1, D_H)),          # b2
                full((D_H, D_OUT_PAD)),  # w3 (lane-padded)
                full((1, D_OUT_PAD)),    # b3 (lane-padded)
            ],
            out_specs=pl.BlockSpec((tile_b_eff, D_OUT_PAD), lambda i: (i, 0)),
        ),
        compiler_params=pltpu.CompilerParams(
            dimension_semantics=("parallel",)),
        cost_estimate=pl.CostEstimate(
            flops=flops, transcendentals=0, bytes_accessed=bytes_accessed),
    )(x, w1, b1, w2, b2, w3p, b3p)

    return out_padded[:B, :D_OUT]


def init_params(key):
    """Deterministic init mirroring PyTorch nn.Linear default:
    U(-1/sqrt(fan_in), 1/sqrt(fan_in)) for both weight and bias."""
    keys = jax.random.split(key, 6)

    def linear(kw, kb, fan_in, fan_out):
        bound = 1.0 / jnp.sqrt(jnp.float32(fan_in))
        w = jax.random.uniform(kw, (fan_in, fan_out), jnp.float32, -bound, bound)
        b = jax.random.uniform(kb, (1, fan_out), jnp.float32, -bound, bound)
        return w, b

    w1, b1 = linear(keys[0], keys[1], D_IN, D_H)
    w2, b2 = linear(keys[2], keys[3], D_H, D_H)
    w3, b3 = linear(keys[4], keys[5], D_H, D_OUT)
    return dict(w1=w1, b1=b1, w2=w2, b2=b2, w3=w3, b3=b3)


def mlp_ref(x, p):
    h1 = jnp.maximum(x @ p["w1"] + p["b1"], 0.0)
    h2 = jnp.maximum(h1 @ p["w2"] + p["b2"], 0.0)
    return h2 @ p["w3"] + p["b3"]


if __name__ == "__main__":
    key = jax.random.PRNGKey(0)
    k_param, k_x = jax.random.split(key)
    params = init_params(k_param)

    # Small, non-multiple-of-8 batch to exercise the padded-tail path and
    # a >1-step grid.
    B = 12
    x = jax.random.normal(k_x, (B, D_IN), jnp.float32)

    out = mlp_forward(x, params)
    out = jax.block_until_ready(out)

    ref = mlp_ref(x, params)
    assert out.shape == (B, D_OUT)
    assert jnp.allclose(out, ref, atol=1e-5, rtol=1e-5)
    print("KERNEL_OK")
</pallas_src>

<mosaic_0001>
module attributes {stable_mosaic.version = 11 : i64} {
  func.func @mlp_kernel(%arg0: i32, %arg1: memref<8x9xf32, #tpu.memory_space<vmem>>, %arg2: memref<9x64xf32, #tpu.memory_space<vmem>>, %arg3: memref<1x64xf32, #tpu.memory_space<vmem>>, %arg4: memref<64x64xf32, #tpu.memory_space<vmem>>, %arg5: memref<1x64xf32, #tpu.memory_space<vmem>>, %arg6: memref<64x128xf32, #tpu.memory_space<vmem>>, %arg7: memref<1x128xf32, #tpu.memory_space<vmem>>, %arg8: memref<8x128xf32, #tpu.memory_space<vmem>>) attributes {dimension_semantics = [#tpu.dimension_semantics<parallel>], iteration_bounds = array<i64: 2>, scalar_prefetch = 0 : i64, scratch_operands = 0 : i64, tpu.core_type = #tpu.core_type<tc>, window_params = [{transform_indices = @transform_0, window_bounds = array<i64: 8, 9>}, {pipeline_mode = #tpu.pipeline_mode<synchronous>, transform_indices = @transform_1, window_bounds = array<i64: 9, 64>}, {pipeline_mode = #tpu.pipeline_mode<synchronous>, transform_indices = @transform_2, window_bounds = array<i64: 1, 64>}, {pipeline_mode = #tpu.pipeline_mode<synchronous>, transform_indices = @transform_3, window_bounds = array<i64: 64, 64>}, {pipeline_mode = #tpu.pipeline_mode<synchronous>, transform_indices = @transform_4, window_bounds = array<i64: 1, 64>}, {pipeline_mode = #tpu.pipeline_mode<synchronous>, transform_indices = @transform_5, window_bounds = array<i64: 64, 128>}, {pipeline_mode = #tpu.pipeline_mode<synchronous>, transform_indices = @transform_6, window_bounds = array<i64: 1, 128>}, {transform_indices = @transform_7, window_bounds = array<i64: 8, 128>}]} {
    %c0 = arith.constant 0 : index
    %c0_0 = arith.constant 0 : index
    %0 = vector.load %arg1[%c0, %c0_0] : memref<8x9xf32, #tpu.memory_space<vmem>>, vector<8x9xf32>
    %c0_1 = arith.constant 0 : index
    %c0_2 = arith.constant 0 : index
    %1 = vector.load %arg2[%c0_1, %c0_2] : memref<9x64xf32, #tpu.memory_space<vmem>>, vector<9x64xf32>
    %cst = arith.constant dense<0.000000e+00> : vector<8x64xf32>
    %2 = tpu.matmul %0, %1, %cst {dimension_numbers = #tpu.dot_dimension_numbers<[1], [0], [0], [1], [0, 0, 1, 1], [], []>} : vector<8x9xf32>, vector<9x64xf32>, vector<8x64xf32> -> vector<8x64xf32>
    %c0_3 = arith.constant 0 : index
    %c0_4 = arith.constant 0 : index
    %3 = vector.load %arg3[%c0_3, %c0_4] : memref<1x64xf32, #tpu.memory_space<vmem>>, vector<1x64xf32>
    %4 = vector.broadcast %3 : vector<1x64xf32> to vector<8x64xf32>
    %5 = arith.addf %2, %4 : vector<8x64xf32>
    %cst_5 = arith.constant 0.000000e+00 : f32
    %6 = vector.broadcast %cst_5 : f32 to vector<8x64xf32>
    %7 = arith.maximumf %5, %6 : vector<8x64xf32>
    %c0_6 = arith.constant 0 : index
    %c0_7 = arith.constant 0 : index
    %8 = vector.load %arg4[%c0_6, %c0_7] : memref<64x64xf32, #tpu.memory_space<vmem>>, vector<64x64xf32>
    %cst_8 = arith.constant dense<0.000000e+00> : vector<8x64xf32>
    %9 = tpu.matmul %7, %8, %cst_8 {dimension_numbers = #tpu.dot_dimension_numbers<[1], [0], [0], [1], [0, 0, 1, 1], [], []>} : vector<8x64xf32>, vector<64x64xf32>, vector<8x64xf32> -> vector<8x64xf32>
    %c0_9 = arith.constant 0 : index
    %c0_10 = arith.constant 0 : index
    %10 = vector.load %arg5[%c0_9, %c0_10] : memref<1x64xf32, #tpu.memory_space<vmem>>, vector<1x64xf32>
    %11 = vector.broadcast %10 : vector<1x64xf32> to vector<8x64xf32>
    %12 = arith.addf %9, %11 : vector<8x64xf32>
    %cst_11 = arith.constant 0.000000e+00 : f32
    %13 = vector.broadcast %cst_11 : f32 to vector<8x64xf32>
    %14 = arith.maximumf %12, %13 : vector<8x64xf32>
    %c0_12 = arith.constant 0 : index
    %c0_13 = arith.constant 0 : index
    %15 = vector.load %arg6[%c0_12, %c0_13] : memref<64x128xf32, #tpu.memory_space<vmem>>, vector<64x128xf32>
    %cst_14 = arith.constant dense<0.000000e+00> : vector<8x128xf32>
    %16 = tpu.matmul %14, %15, %cst_14 {dimension_numbers = #tpu.dot_dimension_numbers<[1], [0], [0], [1], [0, 0, 1, 1], [], []>} : vector<8x64xf32>, vector<64x128xf32>, vector<8x128xf32> -> vector<8x128xf32>
    %c0_15 = arith.constant 0 : index
    %c0_16 = arith.constant 0 : index
    %17 = vector.load %arg7[%c0_15, %c0_16] : memref<1x128xf32, #tpu.memory_space<vmem>>, vector<1x128xf32>
    %18 = vector.broadcast %17 : vector<1x128xf32> to vector<8x128xf32>
    %19 = arith.addf %16, %18 : vector<8x128xf32>
    %c0_17 = arith.constant 0 : index
    %c0_18 = arith.constant 0 : index
    %20 = vector.load %arg8[%c0_17, %c0_18] : memref<8x128xf32, #tpu.memory_space<vmem>>, vector<8x128xf32>
    tpu.vector_store %arg8[%c0_17, %c0_18], %19 {strides = array<i32>} : memref<8x128xf32, #tpu.memory_space<vmem>>, vector<8x128xf32>,
    return
  }
  func.func @transform_0(%arg0: i32) -> (i32, i32) {
    %c0_i32 = arith.constant 0 : i32
    %c0_i32_0 = arith.constant 0 : i32
    return %arg0, %c0_i32 : i32, i32
  }
  func.func @transform_1(%arg0: i32) -> (i32, i32) {
    %c0_i32 = arith.constant 0 : i32
    %c0_i32_0 = arith.constant 0 : i32
    %c0_i32_1 = arith.constant 0 : i32
    return %c0_i32, %c0_i32_0 : i32, i32
  }
  func.func @transform_2(%arg0: i32) -> (i32, i32) {
    %c0_i32 = arith.constant 0 : i32
    %c0_i32_0 = arith.constant 0 : i32
    %c0_i32_1 = arith.constant 0 : i32
    return %c0_i32, %c0_i32_0 : i32, i32
  }
  func.func @transform_3(%arg0: i32) -> (i32, i32) {
    %c0_i32 = arith.constant 0 : i32
    %c0_i32_0 = arith.constant 0 : i32
    %c0_i32_1 = arith.constant 0 : i32
    return %c0_i32, %c0_i32_0 : i32, i32
  }
  func.func @transform_4(%arg0: i32) -> (i32, i32) {
    %c0_i32 = arith.constant 0 : i32
    %c0_i32_0 = arith.constant 0 : i32
    %c0_i32_1 = arith.constant 0 : i32
    return %c0_i32, %c0_i32_0 : i32, i32
  }
  func.func @transform_5(%arg0: i32) -> (i32, i32) {
    %c0_i32 = arith.constant 0 : i32
    %c0_i32_0 = arith.constant 0 : i32
    %c0_i32_1 = arith.constant 0 : i32
    return %c0_i32, %c0_i32_0 : i32, i32
  }
  func.func @transform_6(%arg0: i32) -> (i32, i32) {
    %c0_i32 = arith.constant 0 : i32
    %c0_i32_0 = arith.constant 0 : i32
    %c0_i32_1 = arith.constant 0 : i32
    return %c0_i32, %c0_i32_0 : i32, i32
  }
  func.func @transform_7(%arg0: i32) -> (i32, i32) {
    %c0_i32 = arith.constant 0 : i32
    %c0_i32_0 = arith.constant 0 : i32
    return %arg0, %c0_i32 : i32, i32
  }
}

</mosaic_0001>

<bundles_post_ra>
// kernel: tpu_custom_call.1
= control target key start
LH: loop header
LB: loop body
LE: loop exit
PB: predicated region body
PF: predicated region fallthrough
CT: control target
= control target key end

     0   :  { %s1342_s0 = inlined_call_operand.hbm [shape: f32[16,9], index: 0, kind: input, shape index: {}]   ;;  %s1343_s1 = inlined_call_operand.hbm [shape: f32[9,64], index: 1, kind: input, shape index: {}]   ;;  %s1344_s2 = inlined_call_operand.vmem [shape: f32[1,64], index: 2, kind: input, shape index: {}]   ;;  %s1345_s3 = inlined_call_operand.hbm [shape: f32[64,64], index: 3, kind: input, shape index: {}]   ;;  %s1346_s4 = inlined_call_operand.vmem [shape: f32[1,64], index: 4, kind: input, shape index: {}]   ;;  %s1347_s5 = inlined_call_operand.hbm [shape: f32[64,128], index: 5, kind: input, shape index: {}]   ;;  %s1348_s6 = inlined_call_operand.vmem [shape: f32[1,128], index: 6, kind: input, shape index: {}]   ;;  %s1349_s7 = inlined_call_operand.hbm [shape: f32[16,128], index: 7, kind: output, shape index: {}]  }
   0x1   :  { %1354 = sst [smem:[#allocation15_spill]] %s1343_s1 }
   0x2   :  { %1355 = sst [smem:[#allocation16_spill]] %s1345_s3 }
   0x3   :  { %12 = vsyncpa [#allocation3], 0 }
   0x4   :  { %14 = vsyncpa [#allocation3 + $0x1], 0 }
   0x5   :  { %15 = vsyncpa [#allocation6], 0 }
   0x6   :  { %16 = vsyncpa [#allocation9], 0 }
   0x7   :  { %17 = vsyncpa [#allocation4], 0 }
   0x8   :  { %19 = vsyncpa [#allocation4 + $0x1], 0  ;;  %s1120_s24 = smov 0   ;;  %s1122_s25 = smov 0  }
   0x9   :  { %s1124_s26 = smov 0   ;;  %s1126_s27 = smov 0  }
   0xa LB: > { %s1141_s28 = sadd.s32 4294967295, %s1069_s27   ;;  %s719_s29 = sadd.s32 4294967294, %s1069_s27   ;;  %s1069_s27 = sphi %s1126_s27, %s1377_s27   ;;  %s1065_s26 = sphi %s1124_s26, %s1376_s26   ;;  %s1061_s25 = sphi %s1122_s25, %s1375_s25   ;;  %s1057_s24 = sphi %s1120_s24, %s1374_s24  }
   0xb   : > { %p45_p0 = scmp.ne.s32.totalorder %s1061_s25, %s1057_s24  ;;  %p1350_p1 = scmp.eq.s32.totalorder %s1141_s28, 0 }
   0xc   : > { %p201_p3 = scmp.eq.s32.totalorder %s719_s29, 1  ;;  %p720_p5 = scmp.ge.s32.totalorder %s1069_s27, 1 }
   0xd   : > { %p1150_p4 = por %p1350_p1, %p45_p0  ;;  %p208_p7 = scmp.lt.s32.totalorder %s1069_s27, 3 }
   0xe   : > { %p1155_p6 = por %p201_p3, %p45_p0  ;;  %s1071_s10 = smov [#allocation5]  }
   0xf   : > { %s1356_s30 = scalar_select %p1150_p4, 1, 0 }
  0x10   : > { %s1357_s8 = scalar_select %p1155_p6, 1, 0 }
  0x11   : > { %p1160_p8 = pnand %p720_p5, %p208_p7  ;;  %s220_s11 = sshll.u32 %s1071_s10, 4  ;;  %s221_s11 = int_to_ptr.vmem [resolvable:$true] %s220_s11 }
  0x12   : > { %s1072_s13 = smov [#allocation7]   ;;  %s1073_s15 = smov [#allocation8]  }
  0x13   : > { %s1358_s9 = scalar_select %p1160_p8, 1, 0 }
  0x14   : > { %p826_p9 = pneg %p1160_p8  ;;  %s236_s14 = sshll.u32 %s1072_s13, 4  ;;  %s237_s14 = int_to_ptr.vmem [resolvable:$true] %s236_s14 }
  0x15   : > { %s252_s16 = sshll.u32 %s1073_s15, 4  ;;  %s902_s17 = scalar_lea.vmem %s221_s11, 256  ;;  %s253_s16 = int_to_ptr.vmem [resolvable:$true] %s252_s16 }
  0x16   : > { %p1169_p11 = pnand %p826_p9, %p1350_p1  ;;  %p903_p13 = scmp.ne.s32.totalorder %s221_s11, %s902_s17 }
  0x17   : > { %p910_p5 = scmp.lt.s32.totalorder %s221_s11, %s221_s11  ;;  %p911_p7 = scmp.lt.s32.totalorder %s902_s17, %s902_s17 }
  0x18   : > { %p893_p12 = pneg %p1169_p11 }
  0x19   : > { %p912_p9 = por %p911_p7, %p910_p5 }
  0x1a   : > { %p905_p0 = pnand %p903_p13, %p893_p12 }
  0x1c   : > { %p906_p3 = pneg %p905_p0 }
  0x1e   : > { %p913_p10 = pnand %p912_p9, %p906_p3 }
  0x20   : > { %916 = shalt.err (!%p913_p10)
}
  0x21   : > { %s1074_s18 = smov 128   ;;  %s1075_s19 = smov 8  }
  0x22   : > { %s1360_s1 = sld [smem:[#allocation15_spill]]  ;;  %s928_s22 = scalar_lea.vmem %s237_s14, 1024 }
  0x23   : > { %p929_p1 = scmp.ne.s32.totalorder %s237_s14, %s928_s22  ;;  %p936_p2 = scmp.lt.s32.totalorder %s237_s14, %s237_s14 }
  0x24   : > { %p937_p6 = scmp.lt.s32.totalorder %s928_s22, %s928_s22 }
  0x25   : > { %p931_p13 = pnand %p929_p1, %p893_p12 }
  0x26   : > { %p938_p5 = por %p937_p6, %p936_p2 }
  0x27   : > { %p932_p0 = pneg %p931_p13 }
  0x28   : > { %829 = dma.hbm_to_vmem [thread:$0]  (!%p1169_p11), %s1360_s1, 256, %s221_s11, [#allocation6], %s1074_s18, %s1074_s18, %s1075_s19  }
  0x29   : > { %p939_p3 = pnand %p938_p5, %p932_p0 }
  0x2b   : > { %942 = shalt.err (!%p939_p3)
}
  0x2c   : > { %s1361_s3 = sld [smem:[#allocation16_spill]]  ;;  %s954_s10 = scalar_lea.vmem %s253_s16, 1024 }
  0x2d   : > { %p955_p10 = scmp.ne.s32.totalorder %s253_s16, %s954_s10  ;;  %p962_p9 = scmp.lt.s32.totalorder %s253_s16, %s253_s16 }
  0x2e   : > { %p963_p13 = scmp.lt.s32.totalorder %s954_s10, %s954_s10 }
  0x2f   : > { %p957_p7 = pnand %p955_p10, %p893_p12 }
  0x30   : > { %p964_p4 = por %p963_p13, %p962_p9 }
  0x31   : > { %p958_p1 = pneg %p957_p7 }
  0x32   : > { %832 = dma.hbm_to_vmem [thread:$0]  (!%p1169_p11), %s1361_s3, 1024, %s237_s14, [#allocation6], %s1074_s18, %s1074_s18, %s1075_s19  }
  0x33   : > { %p965_p2 = pnand %p964_p4, %p958_p1 }
  0x35   : > { %968 = shalt.err (!%p965_p2)
}
  0x36   : > { %835 = dma.hbm_to_vmem [thread:$0]  (!%p1169_p11), %s1347_s5, 1024, %s253_s16, [#allocation9], %s1074_s18, %s1074_s18, %s1075_s19  }
  0x37   : > { %s1200_s14 = sadd.s32 1, %s1069_s27   ;;  %s32_s12 = sadd.s32 1, %s1065_s26 }
  0x38   : > { %s29_s15 = ssub.s32 %s1069_s27, %s1200_s14  ;;  %p39_p6 = scmp.ne.s32.totalorder %s1065_s26, %s1061_s25 }
  0x39   : > { %p30_p4 = scmp.eq.s32.totalorder %s29_s15, 0  ;;  %p40_p12 = scmp.eq.s32.totalorder %s1069_s27, 0 }
  0x3a   : > { %p847_p0 = scmp.lt.s32.totalorder %s1069_s27, 2  ;;  %p1362_p3 = scmp.eq.s32.totalorder %s1141_s28, 1 }
  0x3b   : > { %s1210_s17 = scalar_select %p30_p4, %s1065_s26, %s32_s12  }
  0x3c   : > { %p41_p5 = por %p40_p12, %p39_p6  ;;  %p1214_p10 = por %p1362_p3, %p39_p6 }
  0x3d   : > { %s269_s21 = sand.u32 1, %s1065_s26   ;;  %s726_s22 = sshll.u32 %s1069_s27, 7 }
  0x3e   : > { %s1363_s20 = scalar_select %p1214_p10, 1, 0 }
  0x3f   : > { %s725_s16 = sshll.u32 %s269_s21, 3  ;;  %s1223_s23 = scalar_lea.hbm %s1342_s0, %s726_s22 }
  0x40   : > { %s273_s29 = scalar_lea.vmem [#allocation2], %s725_s16  ;;  %p1225_p11 = pnand %p847_p0, %p41_p5 }
  0x41   : > { %s280_s10 = sshll.u32 %s273_s29, 4  ;;  %s270_s13 = scalar_lea.sflag [#allocation3], %s269_s21  ;;  %s281_s10 = int_to_ptr.vmem [resolvable:$true] %s280_s10 }
  0x42   : > { %s969_s15 = scalar_lea.hbm %s1223_s23, 128  ;;  %p971_p1 = pneg %p1225_p11 }
  0x43   : > { %p970_p7 = scmp.ne.s32.totalorder %s1223_s23, %s969_s15  ;;  %s974_s18 = scalar_lea.hbm %s1342_s0, 256 }
  0x44   : > { %p975_p2 = scmp.lt.s32.totalorder %s1223_s23, %s1342_s0  ;;  %p976_p4 = scmp.lt.s32.totalorder %s974_s18, %s969_s15 }
  0x45   : > { %p972_p9 = pnand %p971_p1, %p970_p7 }
  0x46   : > { %p977_p6 = por %p976_p4, %p975_p2 }
  0x47   : > { %p973_p13 = pneg %p972_p9 }
  0x49   : > { %p978_p12 = pnand %p977_p6, %p973_p13 }
  0x4b   : > { %981 = shalt.err (!%p978_p12)
}
  0x4c   : > { %s982_s29 = scalar_lea.vmem %s281_s10, 128  ;;  %s1076_s21 = smov [#allocation2]  }
  0x4d   : > { %p983_p0 = scmp.ne.s32.totalorder %s281_s10, %s982_s29  ;;  %s987_s1 = sshll.u32 %s1076_s21, 4  ;;  %s988_s1 = int_to_ptr.vmem [resolvable:$false] %s987_s1 }
  0x4e   : > { %s989_s3 = scalar_lea.vmem %s988_s1, 256  ;;  %p990_p7 = scmp.lt.s32.totalorder %s281_s10, %s988_s1 }
  0x4f   : > { %p985_p5 = pnand %p983_p0, %p971_p1  ;;  %p991_p9 = scmp.lt.s32.totalorder %s989_s3, %s982_s29 }
  0x51   : > { %p986_p3 = pneg %p985_p5  ;;  %p992_p10 = por %p991_p9, %p990_p7 }
  0x53   : > { %p993_p8 = pnand %p992_p10, %p986_p3 }
  0x55   : > { %996 = shalt.err (!%p993_p8)
}
  0x56   : > { %839 = dma.hbm_to_vmem [thread:$0]  (!%p1225_p11), %s1223_s23, 128, %s281_s10, %s270_s13  }
  0x57   : > { %p1365_p13 = scmp.ne.s32.totalorder %s1358_s9, 0 }
  0x58   : > { %s1246_s15 = sand.u32 (!%p1365_p13), 1, %s1061_s25   ;;  %p1366_p10 = scmp.ne.s32.totalorder (!%p1365_p13), %s1356_s30, 0 }
  0x59   : > { %289 = sbr.rel (%p1365_p13) target bundleno = 709 (0x2c5), region = 48  ;;  %s728_s12 = sshll.u32 (!%p1365_p13), %s1246_s15, 3 }
  0x5a   : > { %s292_s1 = scalar_lea.sflag (!%p1365_p13), [#allocation3], %s1246_s15  ;;  %s295_s3 = scalar_lea.vmem (!%p1365_p13), [#allocation2], %s728_s12 }
  0x5e   : > { %1040 = dma.done.wait (%p1366_p10), %s292_s1, 128  }
  0x5f   : > { %1042 = vsyncadd (%p1366_p10), %s292_s1, 4294967168  ;;  %p1367_p8 = scmp.eq.s32.totalorder %s1141_s28, 0 }
  0x61   : > { %1044 = dma.done.wait (%p1367_p8), [#allocation6], 1280   ;;  %p1368_p11 = pmov %p1367_p8 }
  0x62   : > { %p1369_p1 = pmov %p1367_p8 }
  0x63   : > { %1046 = vsyncadd (%p1368_p11), [#allocation6], 4294966016 }
  0x64   : > { %1048 = dma.done.wait (%p1369_p1), [#allocation9], 1024   ;;  %p1370_p2 = pmov %p1369_p1 }
  0x65   : > { %v1077_v0 = vmov 0.0   ;;  %vm1078_vm0 = vmmov 0   ;;  %vm352_vm1 = vcmask 1040384   ;;  %v340_v1 = vld [vmem:[#allocation5 + $0x8] sm:$0x1]  ;;  %v339_v2 = vld [vmem:[#allocation5] sm:$0xff] }
  0x66   : > { %1050 = vsyncadd (%p1370_p2), [#allocation9], 4294966272  ;;  %765 = vmatprep.subr.mxu0 %v1077_v0  ;;  %769 = vmatprep.mubr.msk.f32.mxu0 %vm1078_vm0, %v1077_v0  ;;  %v338_v3 = vld [vmem:[%s295_s3] sm:$0xff]  ;;  %vm348_vm2 = vcmask 72704   ;;  %v434_v4 = vld [vmem:[#allocation7 + $0x38] sm:$0xff]  ;;  %vm442_vm3 = vcmask 523264  }
  0x67   : > { %772 = vmatprep.subr.mxu1 %v1077_v0  ;;  %788 = vmatprep.mubr.msk.f32.mxu1 %vm1078_vm0, %v1077_v0  ;;  %v433_v5 = vld [vmem:[#allocation7 + $0x30] sm:$0xff]  ;;  %v432_v6 = vld [vmem:[#allocation7 + $0x28] sm:$0xff]  ;;  %v431_v7 = vld [vmem:[#allocation7 + $0x20] sm:$0xff]  ;;  %s741_s22 = sshll.u32 %s1141_s28, 7  ;;  %s337_s18 = scalar_lea.vmem [#allocation10], %s728_s12 }
  0x68   : > { %766 = vmatpush3.msk.msra.mxu0 %vm352_vm1, %v340_v1  ;;  %773 = vmatpush3.msra.mxu1 %v434_v4  ;;  %v430_v8 = vld [vmem:[#allocation7 + $0x18] sm:$0xff]  ;;  %v429_v9 = vld [vmem:[#allocation7 + $0x10] sm:$0xff]  ;;  %v428_v10 = vld [vmem:[#allocation7 + $0x8] sm:$0xff]  ;;  %s620_s19 = sshll.u32 %s337_s18, 4  ;;  %s1305_s21 = scalar_lea.hbm %s1349_s7, %s741_s22  ;;  %s621_s19 = int_to_ptr.vmem [resolvable:$true] %s620_s19 }
  0x69   : > { %767 = vmatprep.subr.mxu0 %v1077_v0  ;;  %774 = vmatprep.subr.mxu1 %v1077_v0  ;;  %v427_v11 = vld [vmem:[#allocation7] sm:$0xff]  ;;  %v524_v12 = vld [vmem:[#allocation8 + $0x38] sm:$0xff]  ;;  %v523_v13 = vld [vmem:[#allocation8 + $0x30] sm:$0xff]  ;;  %s607_s1 = scalar_lea.sflag [#allocation4], %s1246_s15  ;;  %s997_s3 = scalar_lea.vmem %s621_s19, 128 }
  0x6a   : > { %768 = vmatpush3.msra.mxu0 %v339_v2  ;;  %775 = vmatpush3.msra.mxu1 %v433_v5  ;;  %v522_v14 = vld [vmem:[#allocation8 + $0x28] sm:$0xff]  ;;  %v521_v15 = vld [vmem:[#allocation8 + $0x20] sm:$0xff]  ;;  %v520_v16 = vld [vmem:[#allocation8 + $0x18] sm:$0xff]  ;;  %p998_p4 = scmp.ne.s32.totalorder %s621_s19, %s997_s3  ;;  %p1371_p6 = scmp.ne.s32.totalorder %s1363_s20, 0 }
  0x6b   : > { %770 = vmatmul.mubr.msk.f32.vlgmr.msra.gmra.mxu0 %vm348_vm2, %v338_v3  ;;  %776 = vmatprep.subr.mxu1 %v1077_v0  ;;  %v733_v17 = vld [vmem:[%s1344_s2] ss:$0 sm:$0xff]  ;;  %v519_v22 = vld [vmem:[#allocation8 + $0x10] sm:$0xff]  ;;  %v518_v23 = vld [vmem:[#allocation8 + $0x8] sm:$0xff]  ;;  %s1079_s28 = smov [#allocation10]  }
  0x6c   : > { %791 = vmatprep.subr.mxu0 %v1077_v0  ;;  %777 = vmatpush3.msra.mxu1 %v432_v6  ;;  %v517_v24 = vld [vmem:[#allocation8] sm:$0xff]  ;;  %p999_p12 = pnand %p998_p4, %p1371_p6  ;;  %s1001_s30 = sshll.u32 %s1079_s28, 4  ;;  %s1002_s30 = int_to_ptr.vmem [resolvable:$false] %s1001_s30 }
  0x6d   : > { %807 = vmatprep.mubr.msk.f32.mxu0 %vm1078_vm0, %v1077_v0  ;;  %778 = vmatprep.subr.mxu1 %v1077_v0  ;;  %v736_v25 = vld [vmem:[%s1346_s4] ss:$0 sm:$0xff]  ;;  %s1003_s12 = scalar_lea.vmem %s1002_s30, 256  ;;  %p1004_p5 = scmp.lt.s32.totalorder %s621_s19, %s1002_s30 }
  0x6e   : > { %779 = vmatpush3.msra.mxu1 %v431_v7  ;;  %792 = vmatpush3.msra.mxu0 %v524_v12  ;;  %v738_v30 = vld [vmem:[%s1348_s6] ss:$0 sm:$0xff]  ;;  %p1000_p0 = pneg %p999_p12  ;;  %p1005_p3 = scmp.lt.s32.totalorder %s1003_s12, %s997_s3 }
  0x6f   : > { %780 = vmatprep.subr.mxu1 %v1077_v0  ;;  %793 = vmatprep.subr.mxu0 %v1077_v0 }
  0x70   : > { %781 = vmatpush3.msra.mxu1 %v430_v8  ;;  %794 = vmatpush3.msra.mxu0 %v523_v13  ;;  %p1006_p7 = por %p1005_p3, %p1004_p5 }
  0x71   : > { %782 = vmatprep.subr.mxu1 %v1077_v0  ;;  %795 = vmatprep.subr.mxu0 %v1077_v0 }
  0x72   : > { %783 = vmatpush3.msra.mxu1 %v429_v9  ;;  %796 = vmatpush3.msra.mxu0 %v522_v14  ;;  %p1007_p9 = pnand %p1006_p7, %p1000_p0 }
  0x73   : > { %784 = vmatprep.subr.mxu1 %v1077_v0  ;;  %797 = vmatprep.subr.mxu0 %v1077_v0 }
  0x74   : > { %785 = vmatpush3.msra.mxu1 %v428_v10  ;;  %798 = vmatpush3.msra.mxu0 %v521_v15 }
  0x75   : > { %786 = vmatprep.subr.mxu1 %v1077_v0  ;;  %799 = vmatprep.subr.mxu0 %v1077_v0 }
  0x76   : > { %787 = vmatpush3.msra.mxu1 %v427_v11  ;;  %800 = vmatpush3.msra.mxu0 %v520_v16 }
  0x77   : > { %801 = vmatprep.subr.mxu0 %v1077_v0 }
  0x78   : > { %802 = vmatpush3.msra.mxu0 %v519_v22 }
  0x79   : > { %803 = vmatprep.subr.mxu0 %v1077_v0 }
  0x7a   : > { %804 = vmatpush3.msra.mxu0 %v518_v23 }
  0x7b   : > { %805 = vmatprep.subr.mxu0 %v1077_v0 }
  0x7c   : > { %806 = vmatpush3.msra.mxu0 %v517_v24 }
 0x12b   : > { %v422_v18 = vpop.f32.mrf.mxu0 }
 0x12c   : > { %v423_v19 = vadd.f32 %v733_v17, %v422_v18 }
 0x12d   : > { %v771_v20 = vpop.f32.mrf.mxu0 }
 0x12e   : > { %v426_v21 = vmax.f32 %v423_v19, 0.0 }
 0x130   : > { %789 = vmatmul.mubr.msk.f32.vlgmr.msra.gmra.mxu1 %vm442_vm3, %v426_v21 }
 0x1f0   : > { %v512_v26 = vpop.f32.mrf.mxu1 }
 0x1f1   : > { %v513_v27 = vadd.f32 %v736_v25, %v512_v26 }
 0x1f2   : > { %v790_v28 = vpop.f32.mrf.mxu1 }
 0x1f3   : > { %v516_v29 = vmax.f32 %v513_v27, 0.0 }
 0x1f5   : > { %808 = vmatmul.mubr.msk.f32.vlgmr.msra.gmra.mxu0 %vm442_vm3, %v516_v29 }
 0x2b5   : > { %v601_v31 = vpop.f32.mrf.mxu0 }
 0x2b6   : > { %v602_v32 = vadd.f32 %v738_v30, %v601_v31 }
 0x2b7   : > { %v809_v33 = vpop.f32.mrf.mxu0 }
 0x2b8   : > { %605 = vst [vmem:[%s337_s18] sm:$0xff] %v602_v32 }
 0x2b9   : > { %1010 = shalt.err (!%p1007_p9)
}
 0x2ba   : > { %s1011_s9 = scalar_lea.hbm %s1305_s21, 128  ;;  %s1015_s10 = scalar_lea.hbm %s1349_s7, 256 }
 0x2bb   : > { %p1012_p13 = scmp.ne.s32.totalorder %s1305_s21, %s1011_s9  ;;  %p1016_p11 = scmp.lt.s32.totalorder %s1305_s21, %s1349_s7 }
 0x2bc   : > { %p1017_p1 = scmp.lt.s32.totalorder %s1015_s10, %s1011_s9 }
 0x2bd   : > { %p1013_p10 = pnand %p1012_p13, %p1371_p6 }
 0x2be   : > { %p1018_p2 = por %p1017_p1, %p1016_p11 }
 0x2bf   : > { %p1014_p8 = pneg %p1013_p10 }
 0x2c1   : > { %p1019_p4 = pnand %p1018_p2, %p1014_p8 }
 0x2c3   : > { %1022 = shalt.err (!%p1019_p4)
}
 0x2c4   : > { %824 = dma.vmem_to_hbm [thread:$0]  (%p1371_p6), %s621_s19, 128, %s1305_s21, %s607_s1  }
 0x2c5 PF: > { %s632_s22 = sand.u32 1, %s1057_s24   ;;  %p1372_p12 = scmp.ne.s32.totalorder %s1357_s8, 0 }
 0x2c6   : > { %p1373_p0 = scmp.ge.s32.totalorder %s1069_s27, 2  ;;  %s633_s18 = scalar_lea.sflag [#allocation4], %s632_s22 }
 0x2c8   : > { %p841_p5 = pnand %p1373_p0, %p1372_p12 }
 0x2ca   : > { %p842_p3 = pneg %p841_p5 }
 0x2cc   : > { %1052 = dma.done.wait (%p842_p3), %s633_s18, 128  }
 0x2cd   : > { %1054 = vsyncadd (%p842_p3), %s633_s18, 4294967168  ;;  %p22_p7 = scmp.ge.s32.totalorder %s1200_s14, 4   ;;  %s1374_s24 = smov %s1061_s25 }
 0x2ce   : > { %s1375_s25 = smov %s1065_s26  ;;  %s1376_s26 = smov %s1210_s17 }
 0x2cf   : > { %s1377_s27 = smov %s1200_s14  ;;  %24 = sbr.rel (!%p22_p7) target bundleno = 10 (0xa), region = 105 }
 0x2d4   :  { %638 = vsyncpa [#allocation3], 1 }
 0x2d5   :  { %640 = vsyncpa [#allocation3 + $0x1], 1 }
 0x2d6   :  { %641 = vsyncpa [#allocation6], 1 }
 0x2d7   :  { %642 = vsyncpa [#allocation9], 1 }
 0x2d8   :  { %643 = vsyncpa [#allocation4], 1 }
 0x2d9   :  { %645 = vsyncpa [#allocation4 + $0x1], 1 }

</bundles_post_ra>
